<compile_context>
chip_gen: v7x
topology: tpu7x:2x2x1
jax: 0.10.0
libtpu: 0.0.40
codegen_flags: <defaults>
</compile_context>

<pallas_src>
import functools

import jax
import jax.numpy as jnp
from jax.experimental import pallas as pl
from jax.experimental.pallas import tpu as pltpu


def _fused_critic_kernel(feat_ref, act_ref, w1_ref, b1_ref, w2_ref, b2_ref,
                         w3_ref, b3p_ref, o_ref, x_ref,
                         *, f_dim, h1, h2, n_critics, out_pad):
    """One batch tile through all C critics.

    feat_ref : (TB, F)             w1_ref : (D_in, C*H1) fused over critics
    act_ref  : (TB, A)             b1_ref : (1,   C*H1)
    x_ref    : (TB, D_in) scratch  w2_ref : (C, H1, H2), b2_ref : (C, 1, H2)
    w3_ref   : (C, 1, H2)          b3p_ref: (1, CP) lane-padded
    o_ref    : (TB, CP) lane-dense; column c (< C) is critic c's q-value
    """
    cdt = w1_ref.dtype  # MXU operand dtype (f32, or bf16 when use_bf16=True)

    # qvalue_input = concat([features, actions], dim=1), assembled in VMEM so
    # layer 1 is a single matmul (no tiny-K actions matmul, no HBM concat).
    x_ref[:, :f_dim] = feat_ref[...].astype(cdt)
    x_ref[:, f_dim:] = act_ref[...].astype(cdt)

    # Layer 1: fused across all critics -> (TB, C*H1).
    z1 = jnp.dot(x_ref[...], w1_ref[...], preferred_element_type=jnp.float32)
    a1 = jnp.maximum(z1 + b1_ref[...], 0.0)

    tb = a1.shape[0]
    col = jax.lax.broadcasted_iota(jnp.int32, (tb, out_pad), 1)
    slab = jnp.zeros((tb, out_pad), jnp.float32)

    # Layers 2/3: per-critic (cost C*H1*H2, not the block-diag C^2*H1*H2).
    # n_critics is tiny, so the Python loop fully unrolls.
    for c in range(n_critics):
        h = a1[:, c * h1:(c + 1) * h1]                                  # (TB, H1)
        z2 = jnp.dot(h.astype(cdt), w2_ref[c],
                     preferred_element_type=jnp.float32)                # (TB, H2)
        a2 = jnp.maximum(z2 + b2_ref[c], 0.0)
        # Final Linear(H2 -> 1): VPU multiply + lane reduce (no 1-lane MXU dot).
        q = jnp.sum(a2 * w3_ref[c], axis=-1, keepdims=True)             # (TB, 1)
        slab = jnp.where(col == c, q, slab)

    o_ref[...] = (slab + b3p_ref[...]).astype(o_ref.dtype)


def prepare_critic_params(params, *, use_bf16=False):
    """Stacked per-critic params -> kernel-ready params.

    Call ONCE per parameter update (not per forward): under tracing these
    concatenations are real HBM work, so keep them out of the step function.

    params (x @ W convention, i.e. PyTorch Linear weights transposed):
        w1 (C, D_in, H1), b1 (C, 1, H1), w2 (C, H1, H2), b2 (C, 1, H2),
        w3 (C, H2, 1),  b3 (C, 1, 1)

    use_bf16=True feeds the MXU in bf16 (full MXU rate, half the weight VMEM);
    this relaxes the ~1e-5 parity with PyTorch to ~1e-2-class tolerance.
    """
    wdt = jnp.bfloat16 if use_bf16 else jnp.float32
    w1, b1 = params["w1"], params["b1"]
    w2, b2 = params["w2"], params["b2"]
    w3, b3 = params["w3"], params["b3"]
    C = w1.shape[0]
    cp = max(128, ((C + 127) // 128) * 128)  # lane-dense output width

    w1f = jnp.concatenate([w1[c] for c in range(C)], axis=1).astype(wdt)         # (D_in, C*H1)
    b1f = jnp.concatenate([b1[c] for c in range(C)], axis=1).astype(jnp.float32)  # (1,   C*H1)
    w2s = w2.astype(wdt)                                                          # (C, H1, H2)
    b2s = b2.astype(jnp.float32)                                                  # (C, 1,  H2)
    w3s = jnp.transpose(w3, (0, 2, 1)).astype(jnp.float32)                        # (C, 1,  H2)
    b3p = jnp.zeros((1, cp), jnp.float32).at[0, :C].set(b3[:, 0, 0])              # (1, CP)
    return {"w1": w1f, "b1": b1f, "w2": w2s, "b2": b2s, "w3": w3s, "b3pad": b3p}


def _pick_batch_tile(batch):
    """Multiple-of-8 batch tile: aims for >=2 grid steps (so v7x's two
    TensorCores both get work) and prefers an exact divisor of B (avoids a
    ragged, garbage-padded last tile)."""
    if batch <= 16:
        return batch
    tb = min(512, ((-(-batch // 2) + 7) // 8) * 8)
    for cand in range(tb, 7, -8):
        if batch % cand == 0:
            return cand
    return tb


def continuous_critic_forward(obs, actions, fused_params):
    """obs: (B, *obs_shape); actions: (B, A); fused_params from prepare_critic_params.

    Returns a (B, C) float32 array; column c is critic c's q-value.
    """
    B = obs.shape[0]
    features = obs.reshape(B, -1).astype(jnp.float32)      # FlattenExtractor
    actions = actions.astype(jnp.float32)
    F, A = features.shape[1], actions.shape[1]

    w1, b1 = fused_params["w1"], fused_params["b1"]
    w2, b2 = fused_params["w2"], fused_params["b2"]
    w3, b3p = fused_params["w3"], fused_params["b3pad"]
    D_in, CH1 = w1.shape
    C, H1, H2 = w2.shape
    CP = b3p.shape[1]
    assert F + A == D_in, "features_dim + action_dim must match W1 fan_in"
    assert CH1 == C * H1

    tb = _pick_batch_tile(B)
    grid = (pl.cdiv(B, tb),)

    kernel = functools.partial(_fused_critic_kernel, f_dim=F, h1=H1, h2=H2,
                               n_critics=C, out_pad=CP)

    flops = 2 * B * (D_in * CH1 + C * H1 * H2 + C * H2)
    bytes_accessed = (4 * (features.size + actions.size) + 4 * B * CP
                      + sum(int(v.size) * v.dtype.itemsize
                            for v in (w1, b1, w2, b2, w3, b3p)))

    out = pl.pallas_call(
        kernel,
        out_shape=jax.ShapeDtypeStruct((B, CP), jnp.float32),
        grid=grid,
        in_specs=[
            pl.BlockSpec((tb, F), lambda i: (i, 0)),          # features (streamed over batch)
            pl.BlockSpec((tb, A), lambda i: (i, 0)),          # actions  (streamed over batch)
            pl.BlockSpec((D_in, CH1), lambda i: (0, 0)),      # fused W1, VMEM-resident
            pl.BlockSpec((1, CH1), lambda i: (0, 0)),         # fused b1
            pl.BlockSpec((C, H1, H2), lambda i: (0, 0, 0)),   # per-critic W2 stack
            pl.BlockSpec((C, 1, H2), lambda i: (0, 0, 0)),    # per-critic b2
            pl.BlockSpec((C, 1, H2), lambda i: (0, 0, 0)),    # per-critic W3 rows
            pl.BlockSpec((1, CP), lambda i: (0, 0)),          # b3, lane-padded
        ],
        out_specs=pl.BlockSpec((tb, CP), lambda i: (i, 0)),   # lane-dense output slab
        scratch_shapes=[pltpu.VMEM((tb, D_in), w1.dtype)],    # concat([features, actions])
        compiler_params=pltpu.CompilerParams(
            dimension_semantics=("parallel",)),               # shard batch across TCs on v7x
        cost_estimate=pl.CostEstimate(flops=int(flops), transcendentals=0,
                                      bytes_accessed=int(bytes_accessed)),
        # TODO(synk): for very wide net_arch (>=1024) on v7x, single-buffer the
        # resident weight specs (pipeline_mode=pl.Buffered(1)) and/or raise
        # vmem_limit_bytes so a 512-row batch tile still fits scoped VMEM.
    )(features, actions, w1, b1, w2, b2, w3, b3p)

    return out[:, :C]


def continuous_critic_forward_tuple(obs, actions, fused_params):
    """Tuple-of-(B, 1) view matching ContinuousCritic.forward's return signature."""
    q = continuous_critic_forward(obs, actions, fused_params)
    return tuple(q[:, c:c + 1] for c in range(q.shape[1]))


def _reference_forward(obs, actions, params):
    B = obs.shape[0]
    x = jnp.concatenate([obs.reshape(B, -1), actions], axis=1)
    outs = []
    for c in range(params["w1"].shape[0]):
        h = jnp.maximum(x @ params["w1"][c] + params["b1"][c], 0.0)
        h = jnp.maximum(h @ params["w2"][c] + params["b2"][c], 0.0)
        outs.append(h @ params["w3"][c] + params["b3"][c])
    return tuple(outs)


if __name__ == "__main__":
    # Small shapes consistent with the module:
    #   obs: (B, 4, 4) -> FlattenExtractor -> features_dim = 16
    #   action_dim = 4, net_arch = [32, 32], n_critics = 2
    B = 8
    obs_shape = (4, 4)
    features_dim = 16
    action_dim = 4
    net_arch = [32, 32]
    n_critics = 2
    D_in = features_dim + action_dim

    key = jax.random.PRNGKey(0)
    k_obs, k_act, k1, k2, k3, k4, k5, k6 = jax.random.split(key, 8)

    obs = jax.random.normal(k_obs, (B, *obs_shape), dtype=jnp.float32)
    actions = jax.random.normal(k_act, (B, action_dim), dtype=jnp.float32)

    def init(k, shape, scale=0.1):
        return scale * jax.random.normal(k, shape, dtype=jnp.float32)

    params = {
        "w1": init(k1, (n_critics, D_in, net_arch[0])),
        "b1": init(k2, (n_critics, 1, net_arch[0])),
        "w2": init(k3, (n_critics, net_arch[0], net_arch[1])),
        "b2": init(k4, (n_critics, 1, net_arch[1])),
        "w3": init(k5, (n_critics, net_arch[1], 1)),
        "b3": init(k6, (n_critics, 1, 1)),
    }

    # Pack weights once (per parameter update), then run the fused kernel.
    fused = prepare_critic_params(params)                      # f32 path: 1e-5 parity
    q_all = continuous_critic_forward(obs, actions, fused)     # (B, C)
    q_all = jax.block_until_ready(q_all)
    q_tuple = continuous_critic_forward_tuple(obs, actions, fused)

    # Correctness check against a pure-JAX reference of the same math.
    q_ref = _reference_forward(obs, actions, params)
    assert q_all.shape == (B, n_critics)
    for c, (a, b) in enumerate(zip(q_tuple, q_ref)):
        assert a.shape == (B, 1)
        assert jnp.allclose(a, b, atol=1e-5, rtol=1e-5)
        assert jnp.allclose(q_all[:, c:c + 1], b, atol=1e-5, rtol=1e-5)

    print("KERNEL_OK")
</pallas_src>

<mosaic_0001>
module attributes {stable_mosaic.version = 11 : i64} {
  func.func @_fused_critic_kernel(%arg0: i32, %arg1: memref<8x16xf32, #tpu.memory_space<vmem>>, %arg2: memref<8x4xf32, #tpu.memory_space<vmem>>, %arg3: memref<20x64xf32, #tpu.memory_space<vmem>>, %arg4: memref<1x64xf32, #tpu.memory_space<vmem>>, %arg5: memref<2x32x32xf32, #tpu.memory_space<vmem>>, %arg6: memref<2x1x32xf32, #tpu.memory_space<vmem>>, %arg7: memref<2x1x32xf32, #tpu.memory_space<vmem>>, %arg8: memref<1x128xf32, #tpu.memory_space<vmem>>, %arg9: memref<8x128xf32, #tpu.memory_space<vmem>>, %arg10: memref<8x20xf32, #tpu.memory_space<vmem>>) attributes {dimension_semantics = [#tpu.dimension_semantics<parallel>], iteration_bounds = array<i64: 1>, scalar_prefetch = 0 : i64, scratch_operands = 1 : i64, tpu.core_type = #tpu.core_type<tc>, window_params = [{transform_indices = @transform_0, window_bounds = array<i64: 8, 16>}, {transform_indices = @transform_1, window_bounds = array<i64: 8, 4>}, {pipeline_mode = #tpu.pipeline_mode<synchronous>, transform_indices = @transform_2, window_bounds = array<i64: 20, 64>}, {pipeline_mode = #tpu.pipeline_mode<synchronous>, transform_indices = @transform_3, window_bounds = array<i64: 1, 64>}, {pipeline_mode = #tpu.pipeline_mode<synchronous>, transform_indices = @transform_4, window_bounds = array<i64: 2, 32, 32>}, {pipeline_mode = #tpu.pipeline_mode<synchronous>, transform_indices = @transform_5, window_bounds = array<i64: 2, 1, 32>}, {pipeline_mode = #tpu.pipeline_mode<synchronous>, transform_indices = @transform_6, window_bounds = array<i64: 2, 1, 32>}, {pipeline_mode = #tpu.pipeline_mode<synchronous>, transform_indices = @transform_7, window_bounds = array<i64: 1, 128>}, {transform_indices = @transform_8, window_bounds = array<i64: 8, 128>}]} {
    %c0 = arith.constant 0 : index
    %c0_0 = arith.constant 0 : index
    %0 = vector.load %arg1[%c0, %c0_0] : memref<8x16xf32, #tpu.memory_space<vmem>>, vector<8x16xf32>
    %c0_1 = arith.constant 0 : index
    %c0_2 = arith.constant 0 : index
    %1 = vector.load %arg10[%c0_1, %c0_2] : memref<8x20xf32, #tpu.memory_space<vmem>>, vector<8x16xf32>
    tpu.vector_store %arg10[%c0_1, %c0_2], %0 {strides = array<i32>} : memref<8x20xf32, #tpu.memory_space<vmem>>, vector<8x16xf32>,
    %c0_3 = arith.constant 0 : index
    %c0_4 = arith.constant 0 : index
    %2 = vector.load %arg2[%c0_3, %c0_4] : memref<8x4xf32, #tpu.memory_space<vmem>>, vector<8x4xf32>
    %c0_5 = arith.constant 0 : index
    %c16 = arith.constant 16 : index
    %3 = vector.load %arg10[%c0_5, %c16] : memref<8x20xf32, #tpu.memory_space<vmem>>, vector<8x4xf32>
    tpu.vector_store %arg10[%c0_5, %c16], %2 {strides = array<i32>} : memref<8x20xf32, #tpu.memory_space<vmem>>, vector<8x4xf32>,
    %c0_6 = arith.constant 0 : index
    %c0_7 = arith.constant 0 : index
    %4 = vector.load %arg10[%c0_6, %c0_7] : memref<8x20xf32, #tpu.memory_space<vmem>>, vector<8x20xf32>
    %c0_8 = arith.constant 0 : index
    %c0_9 = arith.constant 0 : index
    %5 = vector.load %arg3[%c0_8, %c0_9] : memref<20x64xf32, #tpu.memory_space<vmem>>, vector<20x64xf32>
    %cst = arith.constant dense<0.000000e+00> : vector<8x64xf32>
    %6 = tpu.matmul %4, %5, %cst {dimension_numbers = #tpu.dot_dimension_numbers<[1], [0], [0], [1], [0, 0, 1, 1], [], []>} : vector<8x20xf32>, vector<20x64xf32>, vector<8x64xf32> -> vector<8x64xf32>
    %c0_10 = arith.constant 0 : index
    %c0_11 = arith.constant 0 : index
    %7 = vector.load %arg4[%c0_10, %c0_11] : memref<1x64xf32, #tpu.memory_space<vmem>>, vector<1x64xf32>
    %8 = vector.broadcast %7 : vector<1x64xf32> to vector<8x64xf32>
    %9 = arith.addf %6, %8 : vector<8x64xf32>
    %cst_12 = arith.constant 0.000000e+00 : f32
    %10 = vector.broadcast %cst_12 : f32 to vector<8x64xf32>
    %11 = arith.maximumf %9, %10 : vector<8x64xf32>
    %12 = tpu.iota {dimensions = array<i32: 1>} : vector<8x128xi32>
    %cst_13 = arith.constant 0.000000e+00 : f32
    %13 = vector.broadcast %cst_13 : f32 to vector<8x128xf32>
    %14 = vector.extract_strided_slice %11 {offsets = [0, 0], sizes = [8, 32], strides = [1, 1]} : vector<8x64xf32> to vector<8x32xf32>
    %c0_14 = arith.constant 0 : index
    %c0_15 = arith.constant 0 : index
    %c0_16 = arith.constant 0 : index
    %15 = vector.load %arg5[%c0_14, %c0_15, %c0_16] : memref<2x32x32xf32, #tpu.memory_space<vmem>>, vector<1x32x32xf32>
    %16 = vector.shape_cast %15 : vector<1x32x32xf32> to vector<32x32xf32>
    %cst_17 = arith.constant dense<0.000000e+00> : vector<8x32xf32>
    %17 = tpu.matmul %14, %16, %cst_17 {dimension_numbers = #tpu.dot_dimension_numbers<[1], [0], [0], [1], [0, 0, 1, 1], [], []>} : vector<8x32xf32>, vector<32x32xf32>, vector<8x32xf32> -> vector<8x32xf32>
    %c0_18 = arith.constant 0 : index
    %c0_19 = arith.constant 0 : index
    %c0_20 = arith.constant 0 : index
    %18 = vector.load %arg6[%c0_18, %c0_19, %c0_20] : memref<2x1x32xf32, #tpu.memory_space<vmem>>, vector<1x1x32xf32>
    %19 = vector.shape_cast %18 : vector<1x1x32xf32> to vector<1x32xf32>
    %20 = vector.broadcast %19 : vector<1x32xf32> to vector<8x32xf32>
    %21 = arith.addf %17, %20 : vector<8x32xf32>
    %cst_21 = arith.constant 0.000000e+00 : f32
    %22 = vector.broadcast %cst_21 : f32 to vector<8x32xf32>
    %23 = arith.maximumf %21, %22 : vector<8x32xf32>
    %c0_22 = arith.constant 0 : index
    %c0_23 = arith.constant 0 : index
    %c0_24 = arith.constant 0 : index
    %24 = vector.load %arg7[%c0_22, %c0_23, %c0_24] : memref<2x1x32xf32, #tpu.memory_space<vmem>>, vector<1x1x32xf32>
    %25 = vector.shape_cast %24 : vector<1x1x32xf32> to vector<1x32xf32>
    %26 = vector.broadcast %25 : vector<1x32xf32> to vector<8x32xf32>
    %27 = arith.mulf %23, %26 : vector<8x32xf32>
    %cst_25 = arith.constant dense<0.000000e+00> : vector<8xf32>
    %28 = vector.multi_reduction <add>, %27, %cst_25 [1] : vector<8x32xf32> to vector<8xf32>
    %29 = vector.shape_cast %28 : vector<8xf32> to vector<8x1xf32>
    %c0_i32 = arith.constant 0 : i32
    %30 = vector.broadcast %c0_i32 : i32 to vector<8x128xi32>
    %31 = arith.cmpi eq, %12, %30 : vector<8x128xi32>
    %32 = vector.shape_cast %29 : vector<8x1xf32> to vector<8x1xf32>
    %33 = vector.broadcast %32 : vector<8x1xf32> to vector<8x128xf32>
    %34 = arith.select %31, %33, %13 : vector<8x128xi1>, vector<8x128xf32>
    %35 = vector.extract_strided_slice %11 {offsets = [0, 32], sizes = [8, 32], strides = [1, 1]} : vector<8x64xf32> to vector<8x32xf32>
    %c1 = arith.constant 1 : index
    %c0_26 = arith.constant 0 : index
    %c0_27 = arith.constant 0 : index
    %36 = vector.load %arg5[%c1, %c0_26, %c0_27] : memref<2x32x32xf32, #tpu.memory_space<vmem>>, vector<1x32x32xf32>
    %37 = vector.shape_cast %36 : vector<1x32x32xf32> to vector<32x32xf32>
    %cst_28 = arith.constant dense<0.000000e+00> : vector<8x32xf32>
    %38 = tpu.matmul %35, %37, %cst_28 {dimension_numbers = #tpu.dot_dimension_numbers<[1], [0], [0], [1], [0, 0, 1, 1], [], []>} : vector<8x32xf32>, vector<32x32xf32>, vector<8x32xf32> -> vector<8x32xf32>
    %c1_29 = arith.constant 1 : index
    %c0_30 = arith.constant 0 : index
    %c0_31 = arith.constant 0 : index
    %39 = vector.load %arg6[%c1_29, %c0_30, %c0_31] : memref<2x1x32xf32, #tpu.memory_space<vmem>>, vector<1x1x32xf32>
    %40 = vector.shape_cast %39 : vector<1x1x32xf32> to vector<1x32xf32>
    %41 = vector.broadcast %40 : vector<1x32xf32> to vector<8x32xf32>
    %42 = arith.addf %38, %41 : vector<8x32xf32>
    %cst_32 = arith.constant 0.000000e+00 : f32
    %43 = vector.broadcast %cst_32 : f32 to vector<8x32xf32>
    %44 = arith.maximumf %42, %43 : vector<8x32xf32>
    %c1_33 = arith.constant 1 : index
    %c0_34 = arith.constant 0 : index
    %c0_35 = arith.constant 0 : index
    %45 = vector.load %arg7[%c1_33, %c0_34, %c0_35] : memref<2x1x32xf32, #tpu.memory_space<vmem>>, vector<1x1x32xf32>
    %46 = vector.shape_cast %45 : vector<1x1x32xf32> to vector<1x32xf32>
    %47 = vector.broadcast %46 : vector<1x32xf32> to vector<8x32xf32>
    %48 = arith.mulf %44, %47 : vector<8x32xf32>
    %cst_36 = arith.constant dense<0.000000e+00> : vector<8xf32>
    %49 = vector.multi_reduction <add>, %48, %cst_36 [1] : vector<8x32xf32> to vector<8xf32>
    %50 = vector.shape_cast %49 : vector<8xf32> to vector<8x1xf32>
    %c1_i32 = arith.constant 1 : i32
    %51 = vector.broadcast %c1_i32 : i32 to vector<8x128xi32>
    %52 = arith.cmpi eq, %12, %51 : vector<8x128xi32>
    %53 = vector.shape_cast %50 : vector<8x1xf32> to vector<8x1xf32>
    %54 = vector.broadcast %53 : vector<8x1xf32> to vector<8x128xf32>
    %55 = arith.select %52, %54, %34 : vector<8x128xi1>, vector<8x128xf32>
    %c0_37 = arith.constant 0 : index
    %c0_38 = arith.constant 0 : index
    %56 = vector.load %arg8[%c0_37, %c0_38] : memref<1x128xf32, #tpu.memory_space<vmem>>, vector<1x128xf32>
    %57 = vector.broadcast %56 : vector<1x128xf32> to vector<8x128xf32>
    %58 = arith.addf %55, %57 : vector<8x128xf32>
    %c0_39 = arith.constant 0 : index
    %c0_40 = arith.constant 0 : index
    %59 = vector.load %arg9[%c0_39, %c0_40] : memref<8x128xf32, #tpu.memory_space<vmem>>, vector<8x128xf32>
    tpu.vector_store %arg9[%c0_39, %c0_40], %58 {strides = array<i32>} : memref<8x128xf32, #tpu.memory_space<vmem>>, vector<8x128xf32>,
    return
  }
  func.func @transform_0(%arg0: i32) -> (i32, i32) {
    %c0_i32 = arith.constant 0 : i32
    %c0_i32_0 = arith.constant 0 : i32
    return %arg0, %c0_i32 : i32, i32
  }
  func.func @transform_1(%arg0: i32) -> (i32, i32) {
    %c0_i32 = arith.constant 0 : i32
    %c0_i32_0 = arith.constant 0 : i32
    return %arg0, %c0_i32 : i32, i32
  }
  func.func @transform_2(%arg0: i32) -> (i32, i32) {
    %c0_i32 = arith.constant 0 : i32
    %c0_i32_0 = arith.constant 0 : i32
    %c0_i32_1 = arith.constant 0 : i32
    return %c0_i32, %c0_i32_0 : i32, i32
  }
  func.func @transform_3(%arg0: i32) -> (i32, i32) {
    %c0_i32 = arith.constant 0 : i32
    %c0_i32_0 = arith.constant 0 : i32
    %c0_i32_1 = arith.constant 0 : i32
    return %c0_i32, %c0_i32_0 : i32, i32
  }
  func.func @transform_4(%arg0: i32) -> (i32, i32, i32) {
    %c0_i32 = arith.constant 0 : i32
    %c0_i32_0 = arith.constant 0 : i32
    %c0_i32_1 = arith.constant 0 : i32
    %c0_i32_2 = arith.constant 0 : i32
    return %c0_i32, %c0_i32_0, %c0_i32_1 : i32, i32, i32
  }
  func.func @transform_5(%arg0: i32) -> (i32, i32, i32) {
    %c0_i32 = arith.constant 0 : i32
    %c0_i32_0 = arith.constant 0 : i32
    %c0_i32_1 = arith.constant 0 : i32
    %c0_i32_2 = arith.constant 0 : i32
    return %c0_i32, %c0_i32_0, %c0_i32_1 : i32, i32, i32
  }
  func.func @transform_6(%arg0: i32) -> (i32, i32, i32) {
    %c0_i32 = arith.constant 0 : i32
    %c0_i32_0 = arith.constant 0 : i32
    %c0_i32_1 = arith.constant 0 : i32
    %c0_i32_2 = arith.constant 0 : i32
    return %c0_i32, %c0_i32_0, %c0_i32_1 : i32, i32, i32
  }
  func.func @transform_7(%arg0: i32) -> (i32, i32) {
    %c0_i32 = arith.constant 0 : i32
    %c0_i32_0 = arith.constant 0 : i32
    %c0_i32_1 = arith.constant 0 : i32
    return %c0_i32, %c0_i32_0 : i32, i32
  }
  func.func @transform_8(%arg0: i32) -> (i32, i32) {
    %c0_i32 = arith.constant 0 : i32
    %c0_i32_0 = arith.constant 0 : i32
    return %arg0, %c0_i32 : i32, i32
  }
}

</mosaic_0001>

<bundles_post_ra>
// kernel: tpu_custom_call.1
= control target key start
LH: loop header
LB: loop body
LE: loop exit
PB: predicated region body
PF: predicated region fallthrough
CT: control target
= control target key end

     0   :  { %13 = vsyncpa [#allocation4], 0  ;;  %s662_s0 = inlined_call_operand.vmem [shape: f32[8,16], index: 0, kind: input, shape index: {}]   ;;  %s663_s1 = inlined_call_operand.vmem [shape: f32[8,4], index: 1, kind: input, shape index: {}]   ;;  %s664_s2 = inlined_call_operand.hbm [shape: f32[20,64], index: 2, kind: input, shape index: {}]   ;;  %s665_s3 = inlined_call_operand.vmem [shape: f32[1,64], index: 3, kind: input, shape index: {}]   ;;  %s666_s4 = inlined_call_operand.hbm [shape: f32[2,32,32], index: 4, kind: input, shape index: {}]   ;;  %s667_s5 = inlined_call_operand.vmem [shape: f32[2,1,32], index: 5, kind: input, shape index: {}]   ;;  %s668_s6 = inlined_call_operand.vmem [shape: f32[2,1,32], index: 6, kind: input, shape index: {}]   ;;  %s669_s7 = inlined_call_operand.vmem [shape: f32[1,128], index: 7, kind: input, shape index: {}]   ;;  %s670_s8 = inlined_call_operand.hbm [shape: f32[8,128], index: 8, kind: output, shape index: {}]  }
   0x1   :  { %14 = vsyncpa [#allocation7], 0 }
   0x2   :  { %15 = vsyncpa [#allocation5], 0  ;;  %s540_s27 = smov [#allocation3]   ;;  %s468_s9 = scalar_lea.hbm %s664_s2, 384 }
   0x3   :  { %s25_s28 = sshll.u32 %s540_s27, 4  ;;  %p469_p0 = scmp.ne.s32.totalorder %s664_s2, %s468_s9  ;;  %s26_s28 = int_to_ptr.vmem [resolvable:$true] %s25_s28 }
   0x4   :  { %p472_p1 = scmp.lt.u32.totalorder %s468_s9, %s664_s2 }
   0x6   :  { %p474_p2 = pnand %p472_p1, %p469_p0 }
   0x8   :  { %477 = shalt.err (!%p474_p2)
}
   0x9   :  { %s478_s14 = scalar_lea.vmem %s26_s28, 384  ;;  %p483_p4 = scmp.lt.s32.totalorder %s26_s28, %s26_s28 }
   0xa   :  { %p479_p3 = scmp.ne.s32.totalorder %s26_s28, %s478_s14  ;;  %p484_p5 = scmp.lt.s32.totalorder %s478_s14, %s478_s14 }
   0xc   :  { %p485_p6 = por %p484_p5, %p483_p4 }
   0xe   :  { %p486_p7 = pnand %p485_p6, %p479_p3 }
  0x10   :  { %489 = shalt.err (!%p486_p7)
}
  0x11   :  { %s541_s15 = smov 128   ;;  %s542_s16 = smov 8  }
  0x12   :  { %31 = dma.hbm_to_vmem [thread:$0]  %s664_s2, 384, %s26_s28, [#allocation4], %s541_s15, %s541_s15, %s542_s16  }
  0x13   :  { %s543_s19 = smov [#allocation6]   ;;  %s490_s23 = scalar_lea.hbm %s666_s4, 1024 }
  0x14   :  { %s39_s20 = sshll.u32 %s543_s19, 4  ;;  %p491_p8 = scmp.ne.s32.totalorder %s666_s4, %s490_s23  ;;  %s40_s20 = int_to_ptr.vmem [resolvable:$true] %s39_s20 }
  0x15   :  { %p494_p9 = scmp.lt.u32.totalorder %s490_s23, %s666_s4 }
  0x17   :  { %p496_p10 = pnand %p494_p9, %p491_p8 }
  0x19   :  { %499 = shalt.err (!%p496_p10)
}
  0x1a   :  { %s500_s29 = scalar_lea.vmem %s40_s20, 1024  ;;  %p505_p12 = scmp.lt.s32.totalorder %s40_s20, %s40_s20 }
  0x1b   :  { %p501_p11 = scmp.ne.s32.totalorder %s40_s20, %s500_s29  ;;  %p506_p13 = scmp.lt.s32.totalorder %s500_s29, %s500_s29 }
  0x1d   :  { %p507_p0 = por %p506_p13, %p505_p12 }
  0x1f   :  { %p508_p1 = pnand %p507_p0, %p501_p11 }
  0x21   :  { %511 = shalt.err (!%p508_p1)
}
  0x22   :  { %45 = dma.hbm_to_vmem [thread:$0]  %s666_s4, 1024, %s40_s20, [#allocation7], %s541_s15, %s541_s15, %s542_s16  }
  0x23   :  { %534 = dma.done.wait [#allocation4], 384  }
  0x24   :  { %535 = vsyncadd [#allocation4], 4294966912 }
  0x25   :  { %536 = dma.done.wait [#allocation7], 1024  }
  0x26   :  { %537 = vsyncadd [#allocation7], 4294966272  ;;  %v544_v0 = vmov 0.0|0.0   ;;  %vm545_vm0 = vmmov 0   ;;  %v546_v1 = vmov 0.0   ;;  %vm59_vm1 = vcmask 130048  }
  0x27   :  { %443 = vmatprep.subr.bf16.mxu0 %v544_v0  ;;  %446 = vmatprep.subr.bf16.mxu1 %v544_v0  ;;  %v61_v2 = vld [vmem:[%s663_s1] sm:$0xff]  ;;  %v69_v4 = vld [vmem:[#allocation3] sm:$0xff]  ;;  %s547_s11 = smov 16   ;;  %v70_v5 = vld [vmem:[#allocation3 + $0x8] sm:$0xff]  ;;  %vm83_vm2 = vcmask 1043456   ;;  %vm66_vm3 = vcmask 162944   ;;  %v158_v44 = vlaneseq }
  0x28   :  { %418 = vmatprep.mubr.msk.f32.mxu0 %vm545_vm0, %v546_v1  ;;  %429 = vmatprep.mubr.msk.f32.mxu1 %vm545_vm0, %v546_v1  ;;  %v58_v3 = vld [vmem:[%s662_s0] sm:$0xff]  ;;  %v444_v7 = vpack.c.bf16 %v70_v5, %v69_v4  ;;  %v161_v8 = vld [vmem:[#allocation6 + $0x8] sm:$0xff]  ;;  %v71_v10 = vld [vmem:[#allocation3 + $0x10] sm:$0xf]  ;;  %vm79_vm4 = vcmask 162816   ;;  %vm171_vm5 = vcmask 261120  }
  0x29   :  { %63 = vrot.lane.b32.xlu0 %v61_v2, %s547_s11  ;;  %60 = vst.msk [vmem:[#allocation2] sm:$0xff] %vm59_vm1, %v58_v3  ;;  %v160_v6 = vld [vmem:[#allocation6] sm:$0xff]  ;;  %v162_v13 = vld [vmem:[#allocation6 + $0x10] sm:$0xff]  ;;  %v163_v14 = vld [vmem:[#allocation6 + $0x18] sm:$0xff]  ;;  %s548_s12 = smov 96   ;;  %v159_v45 = vand.u32 127, %v158_v44 }
  0x2a   :  { %v447_v9 = vpack.c.bf16 %v161_v8, %v160_v6  ;;  %445 = vmatpush3.bf16.msra.mxu0 %v444_v7  ;;  %v450_v15 = vpack.c.bf16 %v163_v14, %v162_v13  ;;  %v260_v16 = vld [vmem:[#allocation6 + $0x20] sm:$0xff]  ;;  %v261_v17 = vld [vmem:[#allocation6 + $0x28] sm:$0xff]  ;;  %v262_v18 = vld [vmem:[#allocation6 + $0x30] sm:$0xff] }
  0x2b   :  { %416 = vmatprep.subr.mxu0 %v546_v1  ;;  %v453_v19 = vpack.c.bf16 %v261_v17, %v260_v16  ;;  %v263_v20 = vld [vmem:[#allocation6 + $0x38] sm:$0xff]  ;;  %v386_v22 = vld [vmem:[%s665_s3] ss:$0 sm:$0xff]  ;;  %v393_v36 = vld [vmem:[%s667_s5 + $0x1] ss:$0 sm:$0xff]  ;;  %vm257_vm6 = vcmp.eq.s32.totalorder %v159_v45, 0 }
  0x2c   :  { %448 = vmatpush3.bf16.msra.mxu1 %v447_v9  ;;  %v456_v21 = vpack.c.bf16 %v263_v20, %v262_v18  ;;  %v389_v28 = vld [vmem:[%s667_s5] ss:$0 sm:$0xff]  ;;  %v396_v40 = vld [vmem:[%s668_s6 + $0x1] ss:$0 sm:$0xff]  ;;  %vm359_vm7 = vcmp.eq.s32.totalorder %v159_v45, 1  ;;  %s549_s5 = smov [#allocation8]  }
  0x2d   :  { %449 = vmatprep.subr.bf16.mxu1 %v544_v0  ;;  %v391_v32 = vld [vmem:[%s668_s6] ss:$0 sm:$0xff]  ;;  %s376_s22 = sshll.u32 %s549_s5, 4  ;;  %s377_s22 = int_to_ptr.vmem [resolvable:$true] %s376_s22 }
  0x2e   :  { %417 = vmatpush3.msk.msra.mxu0 %vm83_vm2, %v71_v10  ;;  %v397_v47 = vld [vmem:[%s669_s7] ss:$0 sm:$0xff]  ;;  %s512_s6 = scalar_lea.vmem %s377_s22, 128  ;;  %p517_p3 = scmp.lt.s32.totalorder %s377_s22, %s377_s22 }
  0x2f   :  { %452 = vmatprep.subr.bf16.mxu0 %v544_v0  ;;  %p513_p2 = scmp.ne.s32.totalorder %s377_s22, %s512_s6  ;;  %p518_p4 = scmp.lt.s32.totalorder %s512_s6, %s512_s6 }
  0x30   :  { %451 = vmatpush3.bf16.msra.mxu1 %v450_v15 }
  0x31   :  { %p519_p5 = por %p518_p4, %p517_p3 }
  0x33   :  { %p520_p6 = pnand %p519_p5, %p513_p2 }
  0x9b   :  { %v64_v11 = vpop.permute.xlu0 %63 }
  0x9c   :  { %67 = vst.msk [vmem:[#allocation2] sm:$0xff] %vm66_vm3, %v64_v11 }
  0xa3   :  { %v68_v12 = vld [vmem:[#allocation2] sm:$0xff] }
  0xa4   :  { %419 = vmatmul.mubr.msk.f32.vlgmr.msra.gmra.mrb[0].mxu0 %vm79_vm4, %v68_v12 }
  0xa5   :  { %440 = vmatprep.mubr.msk.f32.mxu0 %vm545_vm0, %v546_v1  ;;  %454 = vmatpush3.bf16.msra.mxu0 %v453_v19 }
  0xa6   :  { %455 = vmatprep.subr.bf16.mxu0 %v544_v0 }
  0xa9   :  { %457 = vmatpush3.bf16.msra.mxu0 %v456_v21 }
 0x177   :  { %v153_v23 = vpop.f32.mrb[0].mxu0 }
 0x178   :  { %v154_v24 = vadd.f32 %v386_v22, %v153_v23  ;;  %v420_v25 = vpop.f32.mrb[1].mxu0 }
 0x17a   :  { %v157_v26 = vmax.f32 %v154_v24, 0.0 }
 0x17c   :  { %272 = vrot.lane.b32.xlu0 %v157_v26, %s548_s12  ;;  %430 = vmatmul.mubr.msk.f32.vlgmr.msra.gmra.mrb[0].mxu1 %vm171_vm5, %v157_v26 }
 0x1ee   :  { %v273_v27 = vpop.permute.xlu0 %272 }
 0x1ef   :  { %441 = vmatmul.mubr.msk.f32.vlgmr.msra.gmra.mrb[2].mxu0 %vm171_vm5, %v273_v27 }
 0x24f   :  { %v241_v29 = vpop.f32.mrb[0].mxu1 }
 0x250   :  { %v242_v30 = vadd.f32 %v389_v28, %v241_v29  ;;  %v431_v31 = vpop.f32.mrb[1].mxu1 }
 0x252   :  { %v245_v33 = vmax.f32 %v242_v30, 0.0 }
 0x254   :  { %v253_v34 = vmul.f32 %v391_v32, %v245_v33 }
 0x256   :  { %v254_v35 = vsel %vm171_vm5, %v253_v34, 0.0 }
 0x257   :  { %255 = vadd.xlane.f32.xlu1 %v254_v35 }
 0x2c2   :  { %v342_v37 = vpop.f32.mrb[2].mxu0 }
 0x2c3   :  { %v343_v38 = vadd.f32 %v393_v36, %v342_v37  ;;  %v442_v39 = vpop.f32.mrb[3].mxu0 }
 0x2c5   :  { %v346_v41 = vmax.f32 %v343_v38, 0.0 }
 0x2c7   :  { %v355_v42 = vmul.f32 %v396_v40, %v346_v41 }
 0x2c9   :  { %v356_v43 = vsel %vm171_vm5, %v355_v42, 0.0 }
 0x2ca   :  { %357 = vadd.xlane.f32.xlu1 %v356_v43 }
 0x2e4   :  { %v256_v46 = vpop.xlane.xlu1 %255 }
 0x2e5   :  { %v258_v48 = vsel %vm257_vm6, %v256_v46, 0.0 }
 0x357   :  { %v358_v49 = vpop.xlane.xlu1 %357 }
 0x358   :  { %v360_v50 = vsel %vm359_vm7, %v358_v49, %v258_v48 }
 0x359   :  { %v368_v51 = vadd.f32 %v397_v47, %v360_v50 }
 0x35b   :  { %369 = vst [vmem:[#allocation8] sm:$0xff] %v368_v51 }
 0x35c   :  { %523 = shalt.err (!%p520_p6)
}
 0x35d   :  { %s524_s25 = scalar_lea.hbm %s670_s8, 128 }
 0x35e   :  { %p525_p7 = scmp.ne.s32.totalorder %s670_s8, %s524_s25  ;;  %p528_p8 = scmp.lt.u32.totalorder %s524_s25, %s670_s8 }
 0x360   :  { %p530_p9 = pnand %p528_p8, %p525_p7 }
 0x362   :  { %533 = shalt.err (!%p530_p9)
}
 0x363   :  { %379 = dma.vmem_to_hbm [thread:$0]  %s377_s22, 128, %s670_s8, [#allocation5]  }
 0x364   :  { %538 = dma.done.wait [#allocation5], 128  }
 0x365   :  { %539 = vsyncadd [#allocation5], 4294967168 }
 0x366   :  { %383 = vsyncpa [#allocation4], 1 }
 0x367   :  { %384 = vsyncpa [#allocation7], 1 }
 0x368   :  { %385 = vsyncpa [#allocation5], 1 }

</bundles_post_ra>
